<compile_context>
chip_gen: v7x
topology: tpu7x:2x2x1
jax: 0.10.0
libtpu: 0.0.40
codegen_flags: <defaults>
</compile_context>

<pallas_src>
import functools

import jax
import jax.numpy as jnp
from jax import lax
from jax.experimental import pallas as pl
from jax.experimental.pallas import tpu as pltpu


def _cosine_attn_kernel(scale_ref, q_ref, k_ref, v_ref, o_ref):
    # Per grid step: scale (hb,1,1) f32 (already exp(clamp(...))),
    #                q (hb,W,L), k (hb,S,L), v (hb,S,D).
    q = q_ref[...]
    k = k_ref[...]
    v = v_ref[...]
    scale = scale_ref[...]  # (hb, 1, 1), precomputed in the wrapper

    qf = q.astype(jnp.float32)
    kf = k.astype(jnp.float32)

    # F.normalize(x, dim=-1) == x / max(||x||, 1e-12) == x * rsqrt(max(sum x^2, 1e-24)).
    # Fold the per-head logit scale into the query normalizer (rsqrt/EUP slot).
    q_inv = lax.rsqrt(jnp.maximum(jnp.sum(qf * qf, axis=-1, keepdims=True), 1e-24))
    k_inv = lax.rsqrt(jnp.maximum(jnp.sum(kf * kf, axis=-1, keepdims=True), 1e-24))
    qn = (qf * (q_inv * scale)).astype(q.dtype)   # native dtype on the MXU
    kn = (kf * k_inv).astype(k.dtype)

    # Batched cosine-similarity logits; contracts last dims directly (no kn.T).
    attn = jnp.einsum("hwl,hsl->hws", qn, kn,
                      preferred_element_type=jnp.float32)       # (hb, W, S) f32

    # Exact, numerically-stable softmax (matches torch.softmax / jax.nn.softmax).
    m = jnp.max(attn, axis=-1, keepdims=True)
    p = jnp.exp(attn - m)
    p = p / jnp.sum(p, axis=-1, keepdims=True)

    o = jnp.einsum("hws,hsd->hwd", p.astype(v.dtype), v,
                   preferred_element_type=jnp.float32)          # (hb, W, D)
    o_ref[...] = o.astype(o_ref.dtype)


def _largest_divisor_leq(n, cap):
    for d in range(min(n, cap), 0, -1):
        if n % d == 0:
            return d
    return 1


@functools.partial(jax.jit, static_argnames=("max_heads_per_step",))
def cosine_attention(queries, keys, values, logit_scale, *, max_heads_per_step=64):
    """queries (B,H,W,L), keys (B,H,S,L), values (B,H,S,D), logit_scale (H,1,1)."""
    B, H, W, L = queries.shape
    _, _, S, D = values.shape
    BH = B * H
    itemsize = jnp.dtype(queries.dtype).itemsize

    # ---- heads fused per grid step (hb), budgeted against VMEM -------------
    # Per fused head: double-buffered q/k/v/o tiles + f32 logits / normalization
    # scratch.  Budget kept well under the v5e scoped default once raised and
    # under v7x's 64 MiB physical VMEM.
    per_head_io = (W * L + S * L + S * D + W * D) * itemsize
    per_head_f32 = (W * S + W * L + S * L) * 4
    per_head = 2 * per_head_io + per_head_f32
    vmem_step_budget = 8 * 1024 * 1024
    cap = max(1, vmem_step_budget // max(per_head, 1))
    cap = min(cap, max_heads_per_step)
    if BH >= 2:
        cap = min(cap, BH // 2)   # keep grid >= 2: megacore split + DMA pipelining
    hb = _largest_divisor_leq(BH, max(cap, 1))
    grid = (BH // hb,)

    q = queries.reshape(BH, W, L)
    k = keys.reshape(BH, S, L)
    v = values.reshape(BH, S, D)

    # exp(clamp(logit_scale, max=log(sqrt(L)))) precomputed once (H scalars),
    # broadcast across batch to line up with the fused (B*H) axis.
    max_log = 0.5 * jnp.log(jnp.float32(L))
    scale_h = jnp.exp(jnp.minimum(logit_scale.reshape(H).astype(jnp.float32), max_log))
    scale = jnp.broadcast_to(scale_h[None, :], (B, H)).reshape(BH, 1, 1)

    flops = 2 * BH * W * S * (L + D) + 3 * BH * (W * L + S * L)
    transcendentals = BH * (W * S + W + S)
    bytes_accessed = (BH * (W * L + S * L + S * D + W * D)) * itemsize + BH * 4

    out = pl.pallas_call(
        _cosine_attn_kernel,
        out_shape=jax.ShapeDtypeStruct((BH, W, D), queries.dtype),
        grid=grid,
        in_specs=[
            pl.BlockSpec((hb, 1, 1), lambda g: (g, 0, 0)),   # per-head logit scale
            pl.BlockSpec((hb, W, L), lambda g: (g, 0, 0)),   # queries
            pl.BlockSpec((hb, S, L), lambda g: (g, 0, 0)),   # keys
            pl.BlockSpec((hb, S, D), lambda g: (g, 0, 0)),   # values
        ],
        out_specs=pl.BlockSpec((hb, W, D), lambda g: (g, 0, 0)),
        compiler_params=pltpu.CompilerParams(
            dimension_semantics=("parallel",),
            vmem_limit_bytes=32 * 1024 * 1024,
        ),
        cost_estimate=pl.CostEstimate(
            flops=flops,
            transcendentals=transcendentals,
            bytes_accessed=bytes_accessed,
        ),
    )(scale, q, k, v)
    return out.reshape(B, H, W, D)


def cosine_attention_ref(queries, keys, values, logit_scale):
    """Pure-JAX reference mirroring the PyTorch forward."""
    B, H, W, L = queries.shape
    scale = jnp.exp(jnp.minimum(logit_scale, jnp.log(jnp.sqrt(jnp.float32(L)))))
    qn = queries / jnp.maximum(
        jnp.linalg.norm(queries, axis=-1, keepdims=True), 1e-12)
    kn = keys / jnp.maximum(jnp.linalg.norm(keys, axis=-1, keepdims=True), 1e-12)
    attn = jnp.einsum("bhwl,bhsl->bhws", qn, kn) * scale[None]
    A = jax.nn.softmax(attn, axis=-1)
    return jnp.einsum("bhws,bhsd->bhwd", A, values)


if __name__ == "__main__":
    num_heads = 4
    B, H, W, L = 2, num_heads, 8, 32   # queries (B, H, W, L)
    S, D = 8, 32                       # values  (B, H, S, D); keys (B, H, S, L)

    key = jax.random.PRNGKey(0)
    kq, kk, kv = jax.random.split(key, 3)
    queries = jax.random.normal(kq, (B, H, W, L), dtype=jnp.float32)
    keys = jax.random.normal(kk, (B, H, S, L), dtype=jnp.float32)
    values = jax.random.normal(kv, (B, H, S, D), dtype=jnp.float32)

    # nn.Parameter init: log(10 * ones((num_heads, 1, 1)))
    logit_scale = jnp.log(10.0 * jnp.ones((num_heads, 1, 1), dtype=jnp.float32))

    out = cosine_attention(queries, keys, values, logit_scale)
    out = jax.block_until_ready(out)

    ref = cosine_attention_ref(queries, keys, values, logit_scale)
    assert out.shape == (B, H, W, D)
    assert jnp.allclose(out, ref, atol=1e-3, rtol=1e-3), "mismatch vs reference"

    print("KERNEL_OK")
</pallas_src>

<mosaic_0001>
module attributes {stable_mosaic.version = 11 : i64} {
  func.func @_cosine_attn_kernel(%arg0: i32, %arg1: memref<4x1x1xf32, #tpu.memory_space<vmem>>, %arg2: memref<4x8x32xf32, #tpu.memory_space<vmem>>, %arg3: memref<4x8x32xf32, #tpu.memory_space<vmem>>, %arg4: memref<4x8x32xf32, #tpu.memory_space<vmem>>, %arg5: memref<4x8x32xf32, #tpu.memory_space<vmem>>) attributes {dimension_semantics = [#tpu.dimension_semantics<parallel>], iteration_bounds = array<i64: 2>, scalar_prefetch = 0 : i64, scratch_operands = 0 : i64, tpu.core_type = #tpu.core_type<tc>, window_params = [{transform_indices = @transform_0, window_bounds = array<i64: 4, 1, 1>}, {transform_indices = @transform_1, window_bounds = array<i64: 4, 8, 32>}, {transform_indices = @transform_2, window_bounds = array<i64: 4, 8, 32>}, {transform_indices = @transform_3, window_bounds = array<i64: 4, 8, 32>}, {transform_indices = @transform_4, window_bounds = array<i64: 4, 8, 32>}]} {
    %c0 = arith.constant 0 : index
    %c0_0 = arith.constant 0 : index
    %c0_1 = arith.constant 0 : index
    %0 = vector.load %arg2[%c0, %c0_0, %c0_1] : memref<4x8x32xf32, #tpu.memory_space<vmem>>, vector<4x8x32xf32>
    %c0_2 = arith.constant 0 : index
    %c0_3 = arith.constant 0 : index
    %c0_4 = arith.constant 0 : index
    %1 = vector.load %arg3[%c0_2, %c0_3, %c0_4] : memref<4x8x32xf32, #tpu.memory_space<vmem>>, vector<4x8x32xf32>
    %c0_5 = arith.constant 0 : index
    %c0_6 = arith.constant 0 : index
    %c0_7 = arith.constant 0 : index
    %2 = vector.load %arg4[%c0_5, %c0_6, %c0_7] : memref<4x8x32xf32, #tpu.memory_space<vmem>>, vector<4x8x32xf32>
    %c0_8 = arith.constant 0 : index
    %c0_9 = arith.constant 0 : index
    %c0_10 = arith.constant 0 : index
    %3 = vector.load %arg1[%c0_8, %c0_9, %c0_10] : memref<4x1x1xf32, #tpu.memory_space<vmem>>, vector<4x1x1xf32>
    %4 = arith.mulf %0, %0 : vector<4x8x32xf32>
    %cst = arith.constant dense<0.000000e+00> : vector<4x8xf32>
    %5 = vector.multi_reduction <add>, %4, %cst [2] : vector<4x8x32xf32> to vector<4x8xf32>
    %6 = vector.shape_cast %5 : vector<4x8xf32> to vector<4x8x1xf32>
    %cst_11 = arith.constant 1.000000e-24 : f32
    %7 = vector.broadcast %cst_11 : f32 to vector<4x8x1xf32>
    %8 = arith.maximumf %6, %7 : vector<4x8x1xf32>
    %9 = math.rsqrt %8 : vector<4x8x1xf32>
    %10 = arith.mulf %1, %1 : vector<4x8x32xf32>
    %cst_12 = arith.constant dense<0.000000e+00> : vector<4x8xf32>
    %11 = vector.multi_reduction <add>, %10, %cst_12 [2] : vector<4x8x32xf32> to vector<4x8xf32>
    %12 = vector.shape_cast %11 : vector<4x8xf32> to vector<4x8x1xf32>
    %cst_13 = arith.constant 1.000000e-24 : f32
    %13 = vector.broadcast %cst_13 : f32 to vector<4x8x1xf32>
    %14 = arith.maximumf %12, %13 : vector<4x8x1xf32>
    %15 = math.rsqrt %14 : vector<4x8x1xf32>
    %16 = vector.broadcast %3 : vector<4x1x1xf32> to vector<4x8x1xf32>
    %17 = arith.mulf %9, %16 : vector<4x8x1xf32>
    %18 = vector.broadcast %17 : vector<4x8x1xf32> to vector<4x8x32xf32>
    %19 = arith.mulf %0, %18 : vector<4x8x32xf32>
    %20 = vector.broadcast %15 : vector<4x8x1xf32> to vector<4x8x32xf32>
    %21 = arith.mulf %1, %20 : vector<4x8x32xf32>
    "tpu.trace_start"() <{level = 10 : i32, message = "hwl,hsl->hws"}> : () -> ()
    %cst_14 = arith.constant dense<0.000000e+00> : vector<4x8x8xf32>
    %22 = tpu.matmul %19, %21, %cst_14 {dimension_numbers = #tpu.dot_dimension_numbers<[2], [2], [1], [1], [0, 0, 0, 1, 1, 1], [0], [0]>} : vector<4x8x32xf32>, vector<4x8x32xf32>, vector<4x8x8xf32> -> vector<4x8x8xf32>
    "tpu.trace_stop"() : () -> ()
    %cst_15 = arith.constant dense<0xFF800000> : vector<4x8xf32>
    %23 = vector.multi_reduction <maximumf>, %22, %cst_15 [2] : vector<4x8x8xf32> to vector<4x8xf32>
    %24 = vector.shape_cast %23 : vector<4x8xf32> to vector<4x8x1xf32>
    %25 = vector.broadcast %24 : vector<4x8x1xf32> to vector<4x8x8xf32>
    %26 = arith.subf %22, %25 : vector<4x8x8xf32>
    %27 = math.exp %26 : vector<4x8x8xf32>
    %cst_16 = arith.constant dense<0.000000e+00> : vector<4x8xf32>
    %28 = vector.multi_reduction <add>, %27, %cst_16 [2] : vector<4x8x8xf32> to vector<4x8xf32>
    %29 = vector.shape_cast %28 : vector<4x8xf32> to vector<4x8x1xf32>
    %30 = vector.broadcast %29 : vector<4x8x1xf32> to vector<4x8x8xf32>
    %31 = arith.divf %27, %30 : vector<4x8x8xf32>
    "tpu.trace_start"() <{level = 10 : i32, message = "hws,hsd->hwd"}> : () -> ()
    %cst_17 = arith.constant dense<0.000000e+00> : vector<4x8x32xf32>
    %32 = tpu.matmul %31, %2, %cst_17 {dimension_numbers = #tpu.dot_dimension_numbers<[2], [1], [1], [2], [0, 0, 0, 1, 1, 2], [0], [0]>} : vector<4x8x8xf32>, vector<4x8x32xf32>, vector<4x8x32xf32> -> vector<4x8x32xf32>
    "tpu.trace_stop"() : () -> ()
    %c0_18 = arith.constant 0 : index
    %c0_19 = arith.constant 0 : index
    %c0_20 = arith.constant 0 : index
    %33 = vector.load %arg5[%c0_18, %c0_19, %c0_20] : memref<4x8x32xf32, #tpu.memory_space<vmem>>, vector<4x8x32xf32>
    tpu.vector_store %arg5[%c0_18, %c0_19, %c0_20], %32 {strides = array<i32>} : memref<4x8x32xf32, #tpu.memory_space<vmem>>, vector<4x8x32xf32>,
    return
  }
  func.func @transform_0(%arg0: i32) -> (i32, i32, i32) {
    %c0_i32 = arith.constant 0 : i32
    %c0_i32_0 = arith.constant 0 : i32
    %c0_i32_1 = arith.constant 0 : i32
    return %arg0, %c0_i32, %c0_i32_0 : i32, i32, i32
  }
  func.func @transform_1(%arg0: i32) -> (i32, i32, i32) {
    %c0_i32 = arith.constant 0 : i32
    %c0_i32_0 = arith.constant 0 : i32
    %c0_i32_1 = arith.constant 0 : i32
    return %arg0, %c0_i32, %c0_i32_0 : i32, i32, i32
  }
  func.func @transform_2(%arg0: i32) -> (i32, i32, i32) {
    %c0_i32 = arith.constant 0 : i32
    %c0_i32_0 = arith.constant 0 : i32
    %c0_i32_1 = arith.constant 0 : i32
    return %arg0, %c0_i32, %c0_i32_0 : i32, i32, i32
  }
  func.func @transform_3(%arg0: i32) -> (i32, i32, i32) {
    %c0_i32 = arith.constant 0 : i32
    %c0_i32_0 = arith.constant 0 : i32
    %c0_i32_1 = arith.constant 0 : i32
    return %arg0, %c0_i32, %c0_i32_0 : i32, i32, i32
  }
  func.func @transform_4(%arg0: i32) -> (i32, i32, i32) {
    %c0_i32 = arith.constant 0 : i32
    %c0_i32_0 = arith.constant 0 : i32
    %c0_i32_1 = arith.constant 0 : i32
    return %arg0, %c0_i32, %c0_i32_0 : i32, i32, i32
  }
}

</mosaic_0001>

<bundles_post_ra>
// kernel: cosine_attention.1
= control target key start
LH: loop header
LB: loop body
LE: loop exit
PB: predicated region body
PF: predicated region fallthrough
CT: control target
= control target key end

     0   :  { %s1976_s0 = inlined_call_operand.vmem [shape: f32[8,1,1], index: 0, kind: input, shape index: {}]   ;;  %s1977_s1 = inlined_call_operand.hbm [shape: f32[8,8,32], index: 1, kind: input, shape index: {}]   ;;  %s1978_s2 = inlined_call_operand.hbm [shape: f32[8,8,32], index: 2, kind: input, shape index: {}]   ;;  %s1979_s3 = inlined_call_operand.hbm [shape: f32[8,8,32], index: 3, kind: input, shape index: {}]   ;;  %s1980_s4 = inlined_call_operand.hbm [shape: f32[8,8,32], index: 4, kind: output, shape index: {}]  }
   0x1   :  { %1987 = sst [smem:[#allocation12_spill]] %s1977_s1 }
   0x2   :  { %1988 = sst [smem:[#allocation13_spill]] %s1978_s2 }
   0x3   :  { %9 = vsyncpa [#allocation3], 0 }
   0x4   :  { %11 = vsyncpa [#allocation3 + $0x1], 0 }
   0x5   :  { %12 = vsyncpa [#allocation6], 0 }
   0x6   :  { %14 = vsyncpa [#allocation6 + $0x1], 0 }
   0x7   :  { %15 = vsyncpa [#allocation4], 0 }
   0x8   :  { %17 = vsyncpa [#allocation4 + $0x1], 0  ;;  %s1615_s15 = smov 0   ;;  %s1617_s16 = smov 0  }
   0x9   :  { %s1619_s17 = smov 0   ;;  %s1621_s18 = smov 0  }
   0xa LB: > { %s1636_s19 = sadd.s32 4294967295, %s1577_s18   ;;  %s1221_s20 = sadd.s32 4294967294, %s1577_s18   ;;  %s1577_s18 = sphi %s1621_s18, %s2008_s18   ;;  %s1573_s17 = sphi %s1619_s17, %s2007_s17   ;;  %s1569_s16 = sphi %s1617_s16, %s2006_s16   ;;  %s1565_s15 = sphi %s1615_s15, %s2005_s15  }
   0xb   : > { %s1640_s21 = sadd.s32 1, %s1577_s18   ;;  %s56_s22 = sadd.s32 1, %s1573_s17 }
   0xc   : > { %s53_s23 = ssub.s32 %s1577_s18, %s1640_s21  ;;  %p63_p0 = scmp.ne.s32.totalorder %s1573_s17, %s1569_s16 }
   0xd   : > { %p54_p1 = scmp.eq.s32.totalorder %s53_s23, 0  ;;  %p64_p2 = scmp.eq.s32.totalorder %s1577_s18, 0 }
   0xe   : > { %p69_p3 = scmp.ne.s32.totalorder %s1569_s16, %s1565_s15  ;;  %p70_p4 = scmp.eq.s32.totalorder %s1636_s19, 0 }
   0xf   : > { %s1652_s24 = scalar_select %p54_p1, %s1573_s17, %s56_s22  }
  0x10   : > { %p65_p5 = por %p64_p2, %p63_p0  ;;  %p1654_p6 = por %p70_p4, %p69_p3 }
  0x11   : > { %p145_p7 = scmp.eq.s32.totalorder %s1636_s19, 1  ;;  %p151_p8 = scmp.eq.s32.totalorder %s1221_s20, 1 }
  0x12   : > { %s1989_s25 = scalar_select %p1654_p6, 1, 0 }
  0x13   : > { %p1342_p10 = scmp.lt.s32.totalorder %s1577_s18, 2  ;;  %p1661_p11 = por %p145_p7, %p63_p0 }
  0x14   : > { %p1665_p12 = por %p151_p8, %p69_p3  ;;  %s179_s28 = sand.u32 1, %s1573_s17  }
  0x15   : > { %s1990_s26 = scalar_select %p1661_p11, 1, 0 }
  0x16   : > { %s1991_s27 = scalar_select %p1665_p12, 1, 0 }
  0x17   : > { %s1671_s29 = sshll.u32 %s1577_s18, 9  ;;  %s1675_s30 = sshll.u32 %s179_s28, 5 }
  0x18   : > { %p1677_p13 = pnand %p1342_p10, %p65_p5  ;;  %s200_s6 = sand.u32 1, %s1577_s18  }
  0x19   : > { %s1993_s2 = sld [smem:[#allocation13_spill]]  ;;  %s204_s10 = scalar_lea.vmem [#allocation5], %s1675_s30 }
  0x1a   : > { %s211_s11 = sshll.u32 %s204_s10, 4  ;;  %s1692_s12 = scalar_lea.sflag [#allocation6], %s200_s6  ;;  %s1689_s11 = int_to_ptr.vmem [resolvable:$true] %s211_s11 }
  0x1b   : > { %p1698_p2 = pneg %p1677_p13 }
  0x1f   : > { %s1686_s9 = scalar_lea.hbm %s1993_s2, %s1671_s29  ;;  %s1422_s23 = scalar_lea.hbm %s1993_s2, 1024 }
  0x20   : > { %s1417_s13 = scalar_lea.hbm %s1686_s9, 512  ;;  %p1423_p5 = scmp.lt.u32.totalorder %s1686_s9, %s1993_s2 }
  0x21   : > { %p1418_p1 = scmp.ne.s32.totalorder %s1686_s9, %s1417_s13  ;;  %p1424_p7 = scmp.lt.u32.totalorder %s1422_s23, %s1417_s13 }
  0x22   : > { %p1426_p10 = scmp.lt.u32.totalorder %s1417_s13, %s1686_s9 }
  0x23   : > { %p1420_p3 = pnand %p1698_p2, %p1418_p1  ;;  %p1425_p8 = por %p1424_p7, %p1423_p5 }
  0x25   : > { %p1421_p4 = pneg %p1420_p3  ;;  %p1427_p9 = por %p1426_p10, %p1425_p8 }
  0x27   : > { %p1428_p0 = pnand %p1427_p9, %p1421_p4 }
  0x29   : > { %1431 = shalt.err (!%p1428_p0)
}
  0x2a   : > { %s1432_s6 = scalar_lea.vmem %s1689_s11, 512  ;;  %s1579_s10 = smov [#allocation5]  }
  0x2b   : > { %p1433_p1 = scmp.ne.s32.totalorder %s1689_s11, %s1432_s6  ;;  %s1437_s20 = sshll.u32 %s1579_s10, 4  ;;  %s1438_s20 = int_to_ptr.vmem [resolvable:$false] %s1437_s20 }
  0x2c   : > { %s1439_s22 = scalar_lea.vmem %s1438_s20, 1024  ;;  %p1440_p11 = scmp.lt.s32.totalorder %s1689_s11, %s1438_s20 }
  0x2d   : > { %p1435_p3 = pnand %p1433_p1, %p1698_p2  ;;  %p1441_p6 = scmp.lt.s32.totalorder %s1439_s22, %s1432_s6 }
  0x2f   : > { %p1436_p12 = pneg %p1435_p3  ;;  %p1442_p5 = por %p1441_p6, %p1440_p11 }
  0x31   : > { %p1443_p7 = pnand %p1442_p5, %p1436_p12 }
  0x33   : > { %1446 = shalt.err (!%p1443_p7)
}
  0x34   : > { %s1983_s13 = smov 128   ;;  %s1985_s23 = smov 8  }
  0x35   : > { %1334 = dma.hbm_to_vmem [thread:$0]  (!%p1677_p13), %s1686_s9, 512, %s1689_s11, %s1692_s12, %s1983_s13, %s1983_s13, %s1985_s23  }
  0x36   : > { %p240_p6 = scmp.lt.s32.totalorder %s1577_s18, 3  ;;  %s1995_s1 = sld [smem:[#allocation12_spill]] }
  0x37   : > { %p1996_p9 = scmp.ge.s32.totalorder %s1577_s18, 1  ;;  %s183_s20 = scalar_lea.vmem [#allocation2], %s1675_s30 }
  0x38   : > { %s190_s22 = sshll.u32 %s183_s20, 4  ;;  %s1743_s9 = scalar_lea.sflag [#allocation3], %s179_s28  ;;  %s1739_s22 = int_to_ptr.vmem [resolvable:$true] %s190_s22 }
  0x39   : > { %p1734_p11 = pnand %p1996_p9, %p240_p6 }
  0x3b   : > { %s1997_s10 = scalar_select %p1734_p11, 1, 0 }
  0x3c   : > { %s1730_s6 = scalar_lea.hbm %s1995_s1, %s1671_s29  ;;  %s1452_s13 = scalar_lea.hbm %s1995_s1, 1024 }
  0x3d   : > { %s1447_s11 = scalar_lea.hbm %s1730_s6, 512  ;;  %p1453_p8 = scmp.lt.u32.totalorder %s1730_s6, %s1995_s1 }
  0x3e   : > { %p1448_p12 = scmp.ne.s32.totalorder %s1730_s6, %s1447_s11  ;;  %p1454_p10 = scmp.lt.u32.totalorder %s1452_s13, %s1447_s11 }
  0x3f   : > { %p1456_p3 = scmp.lt.u32.totalorder %s1447_s11, %s1730_s6 }
  0x40   : > { %p1450_p0 = pnand %p1448_p12, %p1698_p2  ;;  %p1455_p1 = por %p1454_p10, %p1453_p8 }
  0x42   : > { %p1451_p4 = pneg %p1450_p0  ;;  %p1457_p5 = por %p1456_p3, %p1455_p1 }
  0x44   : > { %p1458_p7 = pnand %p1457_p5, %p1451_p4 }
  0x46   : > { %1461 = shalt.err (!%p1458_p7)
}
  0x47   : > { %s1462_s28 = scalar_lea.vmem %s1739_s22, 512  ;;  %s1582_s20 = smov [#allocation2]  }
  0x48   : > { %p1463_p6 = scmp.ne.s32.totalorder %s1739_s22, %s1462_s28  ;;  %s1467_s7 = sshll.u32 %s1582_s20, 4  ;;  %s1468_s7 = int_to_ptr.vmem [resolvable:$false] %s1467_s7 }
  0x49   : > { %s1469_s2 = scalar_lea.vmem %s1468_s7, 1024  ;;  %p1470_p0 = scmp.lt.s32.totalorder %s1739_s22, %s1468_s7 }
  0x4a   : > { %p1465_p9 = pnand %p1463_p6, %p1698_p2  ;;  %p1471_p11 = scmp.lt.s32.totalorder %s1469_s2, %s1462_s28 }
  0x4c   : > { %p1466_p12 = pneg %p1465_p9  ;;  %p1472_p8 = por %p1471_p11, %p1470_p0 }
  0x4e   : > { %p1473_p10 = pnand %p1472_p8, %p1466_p12 }
  0x50   : > { %1476 = shalt.err (!%p1473_p10)
}
  0x51   : > { %s1998_s13 = smov 8   ;;  %s1999_s23 = smov 128  }
  0x52   : > { %1331 = dma.hbm_to_vmem [thread:$0]  (!%p1677_p13), %s1730_s6, 512, %s1739_s22, %s1743_s9, %s1999_s23, %s1999_s23, %s1998_s13  }
  0x53   : > { %s1774_s20 = scalar_lea.hbm %s1979_s3, %s1671_s29  ;;  %s225_s28 = scalar_lea.vmem [#allocation7], %s1675_s30 }
  0x54   : > { %s232_s7 = sshll.u32 %s225_s28, 4  ;;  %s1477_s2 = scalar_lea.hbm %s1774_s20, 512  ;;  %s1777_s7 = int_to_ptr.vmem [resolvable:$true] %s232_s7 }
  0x55   : > { %p1478_p11 = scmp.ne.s32.totalorder %s1774_s20, %s1477_s2  ;;  %s1482_s22 = scalar_lea.hbm %s1979_s3, 1024 }
  0x56   : > { %p1483_p3 = scmp.lt.u32.totalorder %s1774_s20, %s1979_s3  ;;  %p1484_p5 = scmp.lt.u32.totalorder %s1482_s22, %s1477_s2 }
  0x57   : > { %p1480_p4 = pnand %p1478_p11, %p1698_p2  ;;  %p1486_p6 = scmp.lt.u32.totalorder %s1477_s2, %s1774_s20 }
  0x58   : > { %p1485_p7 = por %p1484_p5, %p1483_p3 }
  0x59   : > { %p1481_p1 = pneg %p1480_p4 }
  0x5a   : > { %p1487_p9 = por %p1486_p6, %p1485_p7 }
  0x5c   : > { %p1488_p12 = pnand %p1487_p9, %p1481_p1 }
  0x5e   : > { %1491 = shalt.err (!%p1488_p12)
}
  0x5f   : > { %s1492_s30 = scalar_lea.vmem %s1777_s7, 512  ;;  %s1583_s1 = smov [#allocation7]  }
  0x60   : > { %p1493_p0 = scmp.ne.s32.totalorder %s1777_s7, %s1492_s30  ;;  %s1497_s11 = sshll.u32 %s1583_s1, 4  ;;  %s1498_s11 = int_to_ptr.vmem [resolvable:$false] %s1497_s11 }
  0x61   : > { %s1499_s8 = scalar_lea.vmem %s1498_s11, 1024  ;;  %p1500_p11 = scmp.lt.s32.totalorder %s1777_s7, %s1498_s11 }
  0x62   : > { %p1495_p8 = pnand %p1493_p0, %p1698_p2  ;;  %p1501_p4 = scmp.lt.s32.totalorder %s1499_s8, %s1492_s30 }
  0x64   : > { %p1496_p10 = pneg %p1495_p8  ;;  %p1502_p3 = por %p1501_p4, %p1500_p11 }
  0x66   : > { %p1503_p5 = pnand %p1502_p3, %p1496_p10 }
  0x68   : > { %1506 = shalt.err (!%p1503_p5)
}
  0x69   : > { %1337 = dma.hbm_to_vmem [thread:$0]  (!%p1677_p13), %s1774_s20, 512, %s1777_s7, %s1692_s12, %s1999_s23, %s1999_s23, %s1998_s13  }
  0x6a   : > { %p2000_p2 = scmp.ne.s32.totalorder %s1997_s10, 0 }
  0x6b   : > { %s1807_s14 = sand.u32 (!%p2000_p2), 1, %s1569_s16   ;;  %p2001_p1 = scmp.ne.s32.totalorder (!%p2000_p2), %s1989_s25, 0 }
  0x6c   : > { %244 = sbr.rel (%p2000_p2) target bundleno = 1175 (0x497), region = 36  ;;  %s1810_s28 = sshll.u32 (!%p2000_p2), %s1807_s14, 5 }
  0x6d   : > { %s247_s5 = scalar_lea.sflag (!%p2000_p2), [#allocation3], %s1807_s14  ;;  %s250_s2 = scalar_lea.vmem (!%p2000_p2), [#allocation2], %s1810_s28 }
  0x73   : > { %1552 = dma.done.wait (%p2001_p1), %s247_s5, 512  }
  0x74   : > { %1554 = vsyncadd (%p2001_p1), %s247_s5, 4294966784  ;;  %s255_s12 = sand.u32 1, %s1636_s19   ;;  %s259_s13 = scalar_lea.vmem [#allocation5], %s1810_s28 }
  0x75   : > { %s256_s10 = scalar_lea.sflag [#allocation6], %s255_s12 }
  0x76   : > { %1556 = dma.done.wait (%p2001_p1), %s256_s10, 1024  }
  0x77   : > { %1558 = vsyncadd (%p2001_p1), %s256_s10, 4294966272  ;;  %v1824_v0 = vld [vmem:[%s250_s2] sm:$0xff]  ;;  %vm336_vm0 = vcmask 261120   ;;  %v1826_v1 = vld [vmem:[%s250_s2 + $0x8] sm:$0xff]  ;;  %v1584_v24 = vmov 0   ;;  %v1585_v25 = vmov 0.0  }
  0x78   : > { %v1828_v2 = vld [vmem:[%s250_s2 + $0x10] sm:$0xff]  ;;  %v332_v3 = vmul.f32 %v1824_v0, %v1824_v0  ;;  %v333_v4 = vmul.f32 %v1826_v1, %v1826_v1  ;;  %v1836_v6 = vld [vmem:[%s250_s2 + $0x18] sm:$0xff]  ;;  %v1840_v8 = vld [vmem:[%s259_s13] sm:$0xff]  ;;  %1383 = vset.pattern.permute.xlu0 %v1584_v24  ;;  %1384 = vset.pattern.permute.xlu1 %v1584_v24  ;;  %s1238_s25 = sshll.u32 %s1636_s19, 2  ;;  %vm1586_vm1 = vmmov 0   ;;  %vm741_vm2 = vcmask 64512  }
  0x79   : > { %v334_v5 = vmul.f32 %v1828_v2, %v1828_v2  ;;  %v335_v7 = vmul.f32 %v1836_v6, %v1836_v6  ;;  %v1842_v9 = vld [vmem:[%s259_s13 + $0x8] sm:$0xff]  ;;  %v357_v14 = vmul.f32 %v1840_v8, %v1840_v8  ;;  %v1852_v16 = vld [vmem:[%s259_s13 + $0x10] sm:$0xff]  ;;  %v1854_v17 = vld [vmem:[%s259_s13 + $0x18] sm:$0xff]  ;;  %1280 = vmatprep.subr.mxu0 %v1585_v25  ;;  %1285 = vmatprep.subr.mxu1 %v1585_v25  ;;  %p308_p13 = scmp.lt.s32.totalorder %s1238_s25, 7  ;;  %s268_s6 = scalar_lea.vmem [#allocation7], %s1810_s28 }
  0x7a   : > { %v337_v10 = vsel %vm336_vm0, %v332_v3, 0.0  ;;  %v340_v12 = vsel %vm336_vm0, %v333_v4, 0.0  ;;  %v358_v15 = vmul.f32 %v1842_v9, %v1842_v9  ;;  %v359_v20 = vmul.f32 %v1852_v16, %v1852_v16  ;;  %1282 = vmatprep.mubr.msk.f32.mxu0 %vm1586_vm1, %v1585_v25  ;;  %1287 = vmatprep.mubr.msk.f32.mxu1 %vm1586_vm1, %v1585_v25  ;;  %s306_s22 = scalar_lea.vmem [#allocation8], %s1810_s28  ;;  %s1263_s29 = sshll.u32 %s1636_s19, 9 }
  0x7b   : > { %v343_v11 = vsel %vm336_vm0, %v334_v5, 0.0  ;;  %338 = vadd.xlane.f32.xlu0 %v337_v10  ;;  %v346_v13 = vsel %vm336_vm0, %v335_v7, 0.0  ;;  %v361_v18 = vsel %vm336_vm0, %v357_v14, 0.0  ;;  %v360_v21 = vmul.f32 %v1854_v17, %v1854_v17  ;;  %s2010_s25 = smov (!%p308_p13, %s1238_s25), 7  ;;  %s1096_s9 = sshll.u32 %s306_s22, 4  ;;  %s1925_s9 = int_to_ptr.vmem [resolvable:$true] %s1096_s9 }
  0x7c   : > { %344 = vadd.xlane.f32.xlu1 %v343_v11  ;;  %v364_v19 = vsel %vm336_vm0, %v358_v15, 0.0  ;;  %v367_v22 = vsel %vm336_vm0, %v359_v20, 0.0  ;;  %s310_s7 = scalar_lea.vmem %s1976_s0, %s2010_s25  ;;  %s1931_s11 = scalar_lea.hbm %s1980_s4, %s1263_s29 }
  0x7d   : > { %v370_v23 = vsel %vm336_vm0, %v360_v21, 0.0  ;;  %v1239_v38 = vld [vmem:[%s310_s7] ss:$0 sm:$0xff]  ;;  %v1240_v41 = vld [vmem:[%s310_s7 + $0x1] ss:$0 sm:$0xff]  ;;  %s1083_s8 = scalar_lea.sflag [#allocation4], %s1807_s14 }
  0x7e   : > { %v1241_v44 = vld [vmem:[%s310_s7 + $0x2] ss:$0 sm:$0xff]  ;;  %v1242_v49 = vld [vmem:[%s310_s7 + $0x3] ss:$0 sm:$0xff]  ;;  %s1507_s19 = scalar_lea.vmem %s1925_s9, 512  ;;  %p2002_p6 = scmp.ne.s32.totalorder %s1990_s26, 0 }
  0x7f   : > { %341 = vadd.xlane.f32.xlu0 %v340_v12  ;;  %p1508_p7 = scmp.ne.s32.totalorder %s1925_s9, %s1507_s19  ;;  %s1587_s28 = smov [#allocation8]  }
  0x80   : > { %347 = vadd.xlane.f32.xlu1 %v346_v13  ;;  %s1511_s5 = sshll.u32 %s1587_s28, 4  ;;  %s1512_s5 = int_to_ptr.vmem [resolvable:$false] %s1511_s5 }
  0x81   : > { %p1509_p9 = pnand %p1508_p7, %p2002_p6  ;;  %s1513_s2 = scalar_lea.vmem %s1512_s5, 1024 }
  0x82   : > { %p1514_p0 = scmp.lt.s32.totalorder %s1925_s9, %s1512_s5  ;;  %p1515_p8 = scmp.lt.s32.totalorder %s1513_s2, %s1507_s19 }
  0x83   : > { %362 = vadd.xlane.f32.xlu0 %v361_v18  ;;  %p1510_p12 = pneg %p1509_p9 }
  0x84   : > { %365 = vadd.xlane.f32.xlu1 %v364_v19  ;;  %p1516_p10 = por %p1515_p8, %p1514_p0 }
  0x86   : > { %p1517_p11 = pnand %p1516_p10, %p1510_p12 }
  0x87   : > { %368 = vadd.xlane.f32.xlu0 %v367_v22 }
  0x88   : > { %371 = vadd.xlane.f32.xlu1 %v370_v23 }
 0x108   : > { %v339_v26 = vpop.xlane.xlu0 %338 }
 0x109   : > { %v345_v27 = vpop.xlane.xlu1 %344  ;;  %v349_v28 = vmax.f32 %v339_v26, 1e-24 }
 0x10a   : > { %v351_v29 = vmax.f32 %v345_v27, 1e-24 }
 0x10b   : > { %1385 = vrsqrt.f32 %v349_v28 }
 0x10c   : > { %v342_v30 = vpop.xlane.xlu0 %341  ;;  %1387 = vrsqrt.f32 %v351_v29 }
 0x10d   : > { %v348_v31 = vpop.xlane.xlu1 %347  ;;  %v350_v32 = vmax.f32 %v342_v30, 1e-24 }
 0x10e   : > { %v352_v33 = vmax.f32 %v348_v31, 1e-24 }
 0x10f   : > { %1389 = vrsqrt.f32 %v350_v32 }
 0x110   : > { %v363_v34 = vpop.xlane.xlu0 %362  ;;  %1391 = vrsqrt.f32 %v352_v33 }
 0x111   : > { %v366_v35 = vpop.xlane.xlu1 %365  ;;  %v373_v36 = vmax.f32 %v363_v34, 1e-24 }
 0x112   : > { %v374_v37 = vmax.f32 %v366_v35, 1e-24 }
 0x113   : > { %1393 = vrsqrt.f32 %v373_v36 }
 0x114   : > { %1395 = vrsqrt.f32 %v374_v37  ;;  %v369_v54 = vpop.xlane.xlu0 %368 }
 0x115   : > { %v1386_v39 = vpop.eup %1385  ;;  %v375_v55 = vmax.f32 %v369_v54, 1e-24  ;;  %v372_v56 = vpop.xlane.xlu1 %371 }
 0x116   : > { %v405_v40 = vmul.f32 %v1386_v39, %v1239_v38  ;;  %v1388_v42 = vpop.eup %1387  ;;  %v376_v57 = vmax.f32 %v372_v56, 1e-24  ;;  %v324_v39 = vld [vmem:[%s268_s6] sm:$0xff] }
 0x117   : > { %v407_v47 = vmul.f32 %v1388_v42, %v1241_v44  ;;  %1397 = vrsqrt.f32 %v375_v55 }
 0x118   : > { %411 = vperm.xlu0 %1383, %v405_v40   ;;  %1399 = vrsqrt.f32 %v376_v57  ;;  %v325_v40 = vld [vmem:[%s268_s6 + $0x8] sm:$0xff] }
 0x119   : > { %v1390_v43 = vpop.eup %1389 }
 0x11a   : > { %v406_v45 = vmul.f32 %v1390_v43, %v1240_v41  ;;  %v1392_v46 = vpop.eup %1391 }
 0x11b   : > { %v408_v53 = vmul.f32 %v1392_v46, %v1242_v49 }
 0x11c   : > { %416 = vperm.xlu1 %1384, %v406_v45  }
 0x11d   : > { %v1394_v48 = vpop.eup %1393 }
 0x11e   : > { %v1396_v50 = vpop.eup %1395  ;;  %v433_v51 = vmul.f32 %v1394_v48, %v1840_v8 }
 0x11f   : > { %v434_v52 = vmul.f32 %v1396_v50, %v1842_v9  ;;  %v327_v50 = vld [vmem:[%s268_s6 + $0x18] sm:$0xff] }
 0x120   : > { %421 = vperm.xlu1 %1384, %v407_v47   ;;  %1281 = vmatpush3.xpose.msk.msra.mxu0 %vm336_vm0, %v433_v51  ;;  %v326_v47 = vld [vmem:[%s268_s6 + $0x10] sm:$0xff] }
 0x121   : > { %1286 = vmatpush3.xpose.msk.msra.mxu1 %vm336_vm0, %v434_v52  ;;  %1290 = vmatprep.subr.mxu0 %v1585_v25  ;;  %v1398_v58 = vpop.eup %1397 }
 0x122   : > { %1295 = vmatprep.subr.mxu1 %v1585_v25  ;;  %v435_v60 = vmul.f32 %v1398_v58, %v1852_v16  ;;  %v1400_v61 = vpop.eup %1399 }
 0x123   : > { %v436_v3 = vmul.f32 %v1400_v61, %v1854_v17 }
 0x124   : > { %426 = vperm.xlu1 %1384, %v408_v53  }
 0x197   : > { %v412_v59 = vpop.permute.xlu0 %411 }
 0x198   : > { %v429_v62 = vmul.f32 %v412_v59, %v1824_v0 }
 0x19a   : > { %1283 = vmatmul.mubr.msk.f32.vlgmr.msra.gmra.mrb[0].mxu0 %vm336_vm0, %v429_v62 }
 0x19b   : > { %v417_v63 = vpop.permute.xlu1 %416  ;;  %1291 = vmatpush3.xpose.msk.msra.mxu0 %vm336_vm0, %v435_v60  ;;  %1292 = vmatprep.mubr.msk.f32.mxu0 %vm1586_vm1, %v1585_v25 }
 0x19c   : > { %v430_v4 = vmul.f32 %v417_v63, %v1826_v1  ;;  %1300 = vmatprep.subr.mxu0 %v1585_v25 }
 0x19e   : > { %1288 = vmatmul.mubr.msk.f32.vlgmr.msra.gmra.mrb[0].mxu1 %vm336_vm0, %v430_v4 }
 0x19f   : > { %v422_v5 = vpop.permute.xlu1 %421  ;;  %1296 = vmatpush3.xpose.msk.msra.mxu1 %vm336_vm0, %v436_v3  ;;  %1297 = vmatprep.mubr.msk.f32.mxu1 %vm1586_vm1, %v1585_v25 }
 0x1a0   : > { %v431_v0 = vmul.f32 %v422_v5, %v1828_v2  ;;  %1305 = vmatprep.subr.mxu1 %v1585_v25 }
 0x1a2   : > { %1293 = vmatmul.mubr.msk.f32.vlgmr.msra.gmra.mrb[2].mxu0 %vm336_vm0, %v431_v0 }
 0x1a3   : > { %v427_v7 = vpop.permute.xlu1 %426  ;;  %1302 = vmatprep.mubr.msk.f32.mxu0 %vm1586_vm1, %v1585_v25  ;;  %1301 = vmatpush3.msra.mxu0 %v324_v39 }
 0x1a4   : > { %v432_v1 = vmul.f32 %v427_v7, %v1836_v6  ;;  %1310 = vmatprep.subr.mxu0 %v1585_v25 }
 0x1a6   : > { %1298 = vmatmul.mubr.msk.f32.vlgmr.msra.gmra.mrb[2].mxu1 %vm336_vm0, %v432_v1 }
 0x1a7   : > { %1307 = vmatprep.mubr.msk.f32.mxu1 %vm1586_vm1, %v1585_v25  ;;  %1306 = vmatpush3.msra.mxu1 %v325_v40 }
 0x1a8   : > { %1315 = vmatprep.subr.mxu1 %v1585_v25 }
 0x26d   : > { %v509_v8 = vpop.f32.mrb[0].mxu0 }
 0x26e   : > { %v1284_v9 = vpop.f32.mrb[1].mxu0  ;;  %v742_v2 = vsel %vm741_vm2, %v509_v8, -inf }
 0x26f   : > { %743 = vmax.xlane.f32.xlu1 %v742_v2 }
 0x271   : > { %v585_v10 = vpop.f32.mrb[0].mxu1 }
 0x272   : > { %v1289_v11 = vpop.f32.mrb[1].mxu1  ;;  %v745_v12 = vsel %vm741_vm2, %v585_v10, -inf }
 0x273   : > { %746 = vmax.xlane.f32.xlu0 %v745_v12 }
 0x275   : > { %v661_v13 = vpop.f32.mrb[2].mxu0 }
 0x276   : > { %v1294_v14 = vpop.f32.mrb[3].mxu0  ;;  %v748_v6 = vsel %vm741_vm2, %v661_v13, -inf }
 0x277   : > { %749 = vmax.xlane.f32.xlu1 %v748_v6 }
 0x279   : > { %v737_v15 = vpop.f32.mrb[2].mxu1 }
 0x27a   : > { %v1299_v16 = vpop.f32.mrb[3].mxu1  ;;  %v751_v17 = vsel %vm741_vm2, %v737_v15, -inf }
 0x27b   : > { %752 = vmax.xlane.f32.xlu1 %v751_v17 }
 0x2fc   : > { %v744_v18 = vpop.xlane.xlu1 %743 }
 0x2fd   : > { %v754_v19 = vsub.f32 %v509_v8, %v744_v18 }
 0x2ff   : > { %v758_v20 = vmul.f32 1.442695, %v754_v19 }
 0x300   : > { %v747_v21 = vpop.xlane.xlu0 %746 }
 0x301   : > { %1401 = vpow2.f32 %v758_v20  ;;  %v755_v22 = vsub.f32 %v585_v10, %v747_v21 }
 0x303   : > { %v760_v23 = vmul.f32 1.442695, %v755_v22 }
 0x304   : > { %v750_v24 = vpop.xlane.xlu1 %749 }
 0x305   : > { %1403 = vpow2.f32 %v760_v23  ;;  %v756_v26 = vsub.f32 %v661_v13, %v750_v24 }
 0x307   : > { %v762_v27 = vmul.f32 1.442695, %v756_v26 }
 0x308   : > { %v753_v28 = vpop.xlane.xlu1 %752 }
 0x309   : > { %1405 = vpow2.f32 %v762_v27  ;;  %v757_v29 = vsub.f32 %v737_v15, %v753_v28 }
 0x30b   : > { %v1402_v30 = vpop.eup %1401  ;;  %v764_v31 = vmul.f32 1.442695, %v757_v29 }
 0x30c   : > { %v766_v32 = vsel %vm741_vm2, %v1402_v30, 0.0 }
 0x30d   : > { %1407 = vpow2.f32 %v764_v31  ;;  %767 = vadd.xlane.f32.xlu1 %v766_v32 }
 0x30f   : > { %v1404_v33 = vpop.eup %1403 }
 0x310   : > { %v769_v34 = vsel %vm741_vm2, %v1404_v33, 0.0 }
 0x311   : > { %770 = vadd.xlane.f32.xlu1 %v769_v34 }
 0x313   : > { %v1406_v35 = vpop.eup %1405 }
 0x314   : > { %v772_v36 = vsel %vm741_vm2, %v1406_v35, 0.0 }
 0x315   : > { %773 = vadd.xlane.f32.xlu0 %v772_v36 }
 0x317   : > { %v1408_v37 = vpop.eup %1407 }
 0x318   : > { %v775_v38 = vsel %vm741_vm2, %v1408_v37, 0.0 }
 0x319   : > { %776 = vadd.xlane.f32.xlu1 %v775_v38 }
 0x39a   : > { %v768_v41 = vpop.xlane.xlu1 %767 }
 0x39b   : > { %1409 = vrcp.f32 %v768_v41 }
 0x39e   : > { %v771_v42 = vpop.xlane.xlu1 %770 }
 0x39f   : > { %1411 = vrcp.f32 %v771_v42 }
 0x3a2   : > { %v774_v43 = vpop.xlane.xlu0 %773 }
 0x3a3   : > { %1413 = vrcp.f32 %v774_v43 }
 0x3a5   : > { %v1410_v44 = vpop.eup %1409 }
 0x3a6   : > { %v779_v45 = vmul.f32 %v1410_v44, %v1402_v30  ;;  %v777_v46 = vpop.xlane.xlu1 %776 }
 0x3a7   : > { %1415 = vrcp.f32 %v777_v46 }
 0x3a8   : > { %1303 = vmatmul.mubr.msk.f32.vlgmr.msra.gmra.mrb[4].mxu0 %vm741_vm2, %v779_v45 }
 0x3a9   : > { %v1412_v48 = vpop.eup %1411  ;;  %1311 = vmatpush3.msra.mxu0 %v326_v47  ;;  %1312 = vmatprep.mubr.msk.f32.mxu0 %vm1586_vm1, %v1585_v25 }
 0x3aa   : > { %v781_v49 = vmul.f32 %v1412_v48, %v1404_v33 }
 0x3ac   : > { %1308 = vmatmul.mubr.msk.f32.vlgmr.msra.gmra.mrb[4].mxu1 %vm741_vm2, %v781_v49 }
 0x3ad   : > { %v1414_v51 = vpop.eup %1413  ;;  %1316 = vmatpush3.msra.mxu1 %v327_v50  ;;  %1317 = vmatprep.mubr.msk.f32.mxu1 %vm1586_vm1, %v1585_v25 }
 0x3ae   : > { %v783_v52 = vmul.f32 %v1414_v51, %v1406_v35 }
 0x3b0   : > { %1313 = vmatmul.mubr.msk.f32.vlgmr.msra.gmra.mrb[6].mxu0 %vm741_vm2, %v783_v52 }
 0x3b1   : > { %v1416_v53 = vpop.eup %1415 }
 0x3b2   : > { %v785_v54 = vmul.f32 %v1416_v53, %v1408_v37 }
 0x3b4   : > { %1318 = vmatmul.mubr.msk.f32.vlgmr.msra.gmra.mrb[6].mxu1 %vm741_vm2, %v785_v54 }
 0x47b   : > { %v855_v55 = vpop.f32.mrb[4].mxu0 }
 0x47c   : > { %1078 = vst.msk [vmem:[%s306_s22] sm:$0xff] %vm336_vm0, %v855_v55  ;;  %v1304_v56 = vpop.f32.mrb[5].mxu0 }
 0x47f   : > { %v928_v57 = vpop.f32.mrb[4].mxu1 }
 0x480   : > { %1079 = vst.msk [vmem:[%s306_s22 + $0x8] sm:$0xff] %vm336_vm0, %v928_v57  ;;  %v1309_v58 = vpop.f32.mrb[5].mxu1 }
 0x483   : > { %v1001_v25 = vpop.f32.mrb[6].mxu0 }
 0x484   : > { %1080 = vst.msk [vmem:[%s306_s22 + $0x10] sm:$0xff] %vm336_vm0, %v1001_v25  ;;  %v1314_v59 = vpop.f32.mrb[7].mxu0 }
 0x487   : > { %v1074_v60 = vpop.f32.mrb[6].mxu1 }
 0x488   : > { %1081 = vst.msk [vmem:[%s306_s22 + $0x18] sm:$0xff] %vm336_vm0, %v1074_v60  ;;  %v1319_v61 = vpop.f32.mrb[7].mxu1 }
 0x489   : > { %1520 = shalt.err (!%p1517_p11)
}
 0x48a   : > { %s1521_s12 = scalar_lea.hbm %s1931_s11, 512  ;;  %s1525_s25 = scalar_lea.hbm %s1980_s4, 1024 }
 0x48b   : > { %p1522_p4 = scmp.ne.s32.totalorder %s1931_s11, %s1521_s12  ;;  %p1526_p2 = scmp.lt.u32.totalorder %s1931_s11, %s1980_s4 }
 0x48c   : > { %p1527_p1 = scmp.lt.u32.totalorder %s1525_s25, %s1521_s12  ;;  %p1529_p7 = scmp.lt.u32.totalorder %s1521_s12, %s1931_s11 }
 0x48d   : > { %p1523_p3 = pnand %p1522_p4, %p2002_p6 }
 0x48e   : > { %p1528_p13 = por %p1527_p1, %p1526_p2 }
 0x48f   : > { %p1524_p5 = pneg %p1523_p3 }
 0x490   : > { %p1530_p9 = por %p1529_p7, %p1528_p13 }
 0x492   : > { %p1531_p12 = pnand %p1530_p9, %p1524_p5 }
 0x494   : > { %1534 = shalt.err (!%p1531_p12)
}
 0x495   : > { %s1588_s7 = smov 128   ;;  %s1589_s6 = smov 8  }
 0x496   : > { %1326 = dma.vmem_to_hbm [thread:$0]  (%p2002_p6), %s1925_s9, 512, %s1931_s11, %s1083_s8, %s1588_s7, %s1588_s7, %s1589_s6  }
 0x497 PF: > { %s1111_s22 = sand.u32 1, %s1565_s15   ;;  %p2003_p0 = scmp.ne.s32.totalorder %s1991_s27, 0 }
 0x498   : > { %p2004_p8 = scmp.ge.s32.totalorder %s1577_s18, 2  ;;  %s1112_s29 = scalar_lea.sflag [#allocation4], %s1111_s22 }
 0x49a   : > { %p1339_p10 = pnand %p2004_p8, %p2003_p0 }
 0x49c   : > { %1560 = dma.done.wait (!%p1339_p10), %s1112_s29, 512  }
 0x49d   : > { %1562 = vsyncadd (!%p1339_p10), %s1112_s29, 4294966784  ;;  %p20_p11 = scmp.ge.s32.totalorder %s1640_s21, 4   ;;  %s2005_s15 = smov %s1569_s16 }
 0x49e   : > { %s2006_s16 = smov %s1573_s17  ;;  %s2007_s17 = smov %s1652_s24 }
 0x49f   : > { %s2008_s18 = smov %s1640_s21  ;;  %22 = sbr.rel (!%p20_p11) target bundleno = 10 (0xa), region = 108 }
 0x4a6   :  { %1117 = vsyncpa [#allocation3], 1 }
 0x4a7   :  { %1119 = vsyncpa [#allocation3 + $0x1], 1 }
 0x4a8   :  { %1120 = vsyncpa [#allocation6], 1 }
 0x4a9   :  { %1122 = vsyncpa [#allocation6 + $0x1], 1 }
 0x4aa   :  { %1123 = vsyncpa [#allocation4], 1 }
 0x4ab   :  { %1125 = vsyncpa [#allocation4 + $0x1], 1 }

</bundles_post_ra>
